<compile_context>
chip_gen: v6e
topology: v6e:2x2x1
jax: 0.10.0
libtpu: 0.0.40
codegen_flags: <defaults>
</compile_context>

<pallas_src>
import jax
import jax.numpy as jnp
from jax.experimental import pallas as pl
from jax.experimental.pallas import tpu as pltpu

PACK_LANES = 128                     # lanes per vreg row
IN_FEATURES = 16
OUT_FEATURES = 7
PACK = PACK_LANES // IN_FEATURES     # 8 samples packed per 128-lane row
KP = PACK * IN_FEATURES              # 128 packed input lanes
NP = PACK * OUT_FEATURES             # 56 packed output lanes


def packed_linear_kernel(x_ref, w_ref, b_ref, o_ref):
    # x_ref: (tr, 128)  packed activations (8 samples per row)
    # w_ref: (128, 56)  block-diagonal weight (8 copies of W^T), VMEM-resident
    # b_ref: (1, 56)    bias tiled 8x, VMEM-resident
    # o_ref: (tr, 56)   packed logits
    y = jnp.dot(x_ref[...], w_ref[...], preferred_element_type=jnp.float32)
    o_ref[...] = (y + b_ref[...]).astype(o_ref.dtype)


def _round_up(v, m):
    return -(-v // m) * m


def _packed_linear(x_packed, w_blk, b_blk, *, tile_rows):
    """Run the packed kernel over (R, 128) rows; returns (R, 56)."""
    R = x_packed.shape[0]
    dsize = jnp.dtype(x_packed.dtype).itemsize

    tr = min(tile_rows, R)
    if tr == R and R >= 16:
        # Split into >=2 grid steps so ("parallel",) can shard the batch axis
        # across both TensorCores on v7x; multiple of 8 keeps the BlockSpec legal.
        tr = _round_up(pl.cdiv(R, 2), 8)
    grid = (pl.cdiv(R, tr),)   # partial last block: OOB reads padded, writes masked

    return pl.pallas_call(
        packed_linear_kernel,
        out_shape=jax.ShapeDtypeStruct((R, NP), x_packed.dtype),
        grid=grid,
        in_specs=[
            pl.BlockSpec((tr, KP), lambda i: (i, 0)),   # streamed / double-buffered
            pl.BlockSpec((KP, NP), lambda i: (0, 0)),   # resident weight
            pl.BlockSpec((1, NP), lambda i: (0, 0)),    # resident bias
        ],
        out_specs=pl.BlockSpec((tr, NP), lambda i: (i, 0)),
        compiler_params=pltpu.CompilerParams(
            dimension_semantics=("parallel",)),
        cost_estimate=pl.CostEstimate(
            flops=2 * R * KP * NP,         # padded-MXU count (block-diag zeros incl.)
            transcendentals=0,
            bytes_accessed=dsize * (R * KP + KP * NP + NP + R * NP)),
    )(x_packed, w_blk, b_blk)


def make_linear_forward(w, b, *, tile_rows=4096):
    """Build the forward for torch.nn.Linear(16, 7): y = x @ w.T + b.

    w: (7, 16) float32 (PyTorch layout), b: (7,) float32.
    Weight packing (kron / tile) is done once here, not per call.
    """
    assert w.shape == (OUT_FEATURES, IN_FEATURES)
    w = jnp.asarray(w, jnp.float32)
    b = jnp.asarray(b, jnp.float32)

    # (128, 56) block-diagonal weight = diag(W^T, ..., W^T); (1, 56) tiled bias.
    w_blk = jnp.kron(jnp.eye(PACK, dtype=w.dtype), w.T)
    b_blk = jnp.tile(b, PACK).reshape(1, NP)
    wt = w.T

    @jax.jit
    def forward(x):
        B = x.shape[0]
        rem = B % PACK            # static under jit
        b_main = B - rem
        parts = []
        if b_main:
            R = b_main // PACK
            x_packed = x[:b_main].reshape(R, KP)          # contiguous, no pad copy
            out_packed = _packed_linear(x_packed, w_blk, b_blk, tile_rows=tile_rows)
            parts.append(out_packed.reshape(b_main, OUT_FEATURES))
        if rem:
            # <=7 leftover samples: tiny dense matmul beats padding the whole array.
            parts.append(x[b_main:] @ wt + b)
        return parts[0] if len(parts) == 1 else jnp.concatenate(parts, axis=0)

    return forward


if __name__ == "__main__":
    key = jax.random.PRNGKey(0)
    kw, kb, k1, k2, k3 = jax.random.split(key, 5)

    # Deterministic params (mimic PyTorch's U(-1/sqrt(in), 1/sqrt(in)) init).
    bound = 1.0 / jnp.sqrt(jnp.float32(IN_FEATURES))
    w = jax.random.uniform(kw, (OUT_FEATURES, IN_FEATURES), jnp.float32, -bound, bound)
    b = jax.random.uniform(kb, (OUT_FEATURES,), jnp.float32, -bound, bound)

    forward = make_linear_forward(w, b)

    #  B=8   : single full packed row, grid of 1
    #  B=13  : ragged batch -> kernel prefix (8 rows) + jnp.dot tail (5 rows)
    #  B=270 : prefix of 264 rows -> R=33, tr=24, 2 grid steps with a partial
    #          (masked) last block + 6-row tail
    for kk, B in ((k1, 8), (k2, 13), (k3, 270)):
        x = jax.random.normal(kk, (B, IN_FEATURES), jnp.float32)
        y = jax.block_until_ready(forward(x))
        y_ref = x @ w.T + b
        assert y.shape == (B, OUT_FEATURES), f"bad shape at B={B}: {y.shape}"
        assert jnp.allclose(y, y_ref, atol=1e-5, rtol=1e-5), f"mismatch at B={B}"

    print("KERNEL_OK")
</pallas_src>

<mosaic_0001>
module attributes {stable_mosaic.version = 11 : i64} {
  func.func @packed_linear_kernel(%arg0: i32, %arg1: memref<1x128xf32, #tpu.memory_space<vmem>>, %arg2: memref<128x56xf32, #tpu.memory_space<vmem>>, %arg3: memref<1x56xf32, #tpu.memory_space<vmem>>, %arg4: memref<1x56xf32, #tpu.memory_space<vmem>>) attributes {dimension_semantics = [#tpu.dimension_semantics<parallel>], iteration_bounds = array<i64: 1>, scalar_prefetch = 0 : i64, scratch_operands = 0 : i64, tpu.core_type = #tpu.core_type<tc>, window_params = [{transform_indices = @transform_0, window_bounds = array<i64: 1, 128>}, {pipeline_mode = #tpu.pipeline_mode<synchronous>, transform_indices = @transform_1, window_bounds = array<i64: 128, 56>}, {pipeline_mode = #tpu.pipeline_mode<synchronous>, transform_indices = @transform_2, window_bounds = array<i64: 1, 56>}, {transform_indices = @transform_3, window_bounds = array<i64: 1, 56>}]} {
    %c0 = arith.constant 0 : index
    %c0_0 = arith.constant 0 : index
    %0 = vector.load %arg1[%c0, %c0_0] : memref<1x128xf32, #tpu.memory_space<vmem>>, vector<1x128xf32>
    %c0_1 = arith.constant 0 : index
    %c0_2 = arith.constant 0 : index
    %1 = vector.load %arg2[%c0_1, %c0_2] : memref<128x56xf32, #tpu.memory_space<vmem>>, vector<128x56xf32>
    %cst = arith.constant dense<0.000000e+00> : vector<1x56xf32>
    %2 = tpu.matmul %0, %1, %cst {dimension_numbers = #tpu.dot_dimension_numbers<[1], [0], [0], [1], [0, 0, 1, 1], [], []>} : vector<1x128xf32>, vector<128x56xf32>, vector<1x56xf32> -> vector<1x56xf32>
    %c0_3 = arith.constant 0 : index
    %c0_4 = arith.constant 0 : index
    %3 = vector.load %arg3[%c0_3, %c0_4] : memref<1x56xf32, #tpu.memory_space<vmem>>, vector<1x56xf32>
    %4 = arith.addf %2, %3 : vector<1x56xf32>
    %c0_5 = arith.constant 0 : index
    %c0_6 = arith.constant 0 : index
    %5 = vector.load %arg4[%c0_5, %c0_6] : memref<1x56xf32, #tpu.memory_space<vmem>>, vector<1x56xf32>
    tpu.vector_store %arg4[%c0_5, %c0_6], %4 {strides = array<i32>} : memref<1x56xf32, #tpu.memory_space<vmem>>, vector<1x56xf32>,
    return
  }
  func.func @transform_0(%arg0: i32) -> (i32, i32) {
    %c0_i32 = arith.constant 0 : i32
    %c0_i32_0 = arith.constant 0 : i32
    return %arg0, %c0_i32 : i32, i32
  }
  func.func @transform_1(%arg0: i32) -> (i32, i32) {
    %c0_i32 = arith.constant 0 : i32
    %c0_i32_0 = arith.constant 0 : i32
    %c0_i32_1 = arith.constant 0 : i32
    return %c0_i32, %c0_i32_0 : i32, i32
  }
  func.func @transform_2(%arg0: i32) -> (i32, i32) {
    %c0_i32 = arith.constant 0 : i32
    %c0_i32_0 = arith.constant 0 : i32
    %c0_i32_1 = arith.constant 0 : i32
    return %c0_i32, %c0_i32_0 : i32, i32
  }
  func.func @transform_3(%arg0: i32) -> (i32, i32) {
    %c0_i32 = arith.constant 0 : i32
    %c0_i32_0 = arith.constant 0 : i32
    return %arg0, %c0_i32 : i32, i32
  }
}

</mosaic_0001>

<bundles_post_ra>
// kernel: forward.1
= control target key start
LH: loop header
LB: loop body
LE: loop exit
PB: predicated region body
PF: predicated region fallthrough
CT: control target
= control target key end

     0   :  { %8 = vsyncpa [#allocation3], 0  ;;  %s202_s12 = smov [#allocation2]   ;;  %s239_s0 = inlined_call_operand.vmem [shape: f32[1,128], index: 0, kind: input, shape index: {}]   ;;  %s240_s1 = inlined_call_operand.hbm [shape: f32[128,56], index: 1, kind: input, shape index: {}]   ;;  %s241_s2 = inlined_call_operand.vmem [shape: f32[1,56], index: 2, kind: input, shape index: {}]   ;;  %s242_s3 = inlined_call_operand.vmem [shape: f32[1,56], index: 3, kind: output, shape index: {}]  }
   0x1   :  { %s16_s13 = sshll.u32 %s202_s12, 4  ;;  %s17_s13 = int_to_ptr.vmem [resolvable:$true] %s16_s13 }
   0x2   :  { %s188_s14 = scalar_lea.vmem %s17_s13, 2048  ;;  %p193_p1 = scmp.lt.s32.totalorder %s17_s13, %s17_s13 }
   0x3   :  { %p189_p0 = scmp.ne.s32.totalorder %s17_s13, %s188_s14  ;;  %p194_p2 = scmp.lt.s32.totalorder %s188_s14, %s188_s14 }
   0x5   :  { %p195_p3 = por %p194_p2, %p193_p1 }
   0x7   :  { %p196_p4 = pnand %p195_p3, %p189_p0 }
   0x9   :  { %199 = shalt.err (!%p196_p4)
}
   0xa   :  { %s203_s15 = smov 128   ;;  %s204_s16 = smov 8  }
   0xb   :  { %22 = dma.hbm_to_vmem [thread:$0]  %s240_s1, 2048, %s17_s13, [#allocation3], %s203_s15, %s203_s15, %s204_s16  }
   0xc   :  { %200 = dma.done.wait [#allocation3], 2048  }
   0xd   :  { %201 = vsyncadd [#allocation3], 4294965248  ;;  %v205_v0 = vmov 0.0   ;;  %vm206_vm0 = vmmov 0   ;;  %v44_v1 = vld [vmem:[#allocation2 + $0x78] sm:$0xff]  ;;  %v43_v2 = vld [vmem:[#allocation2 + $0x70] sm:$0xff] }
   0xe   :  { %140 = vmatprep.subr.mxu0 %v205_v0  ;;  %172 = vmatprep.mubr.msk.f32.mxu0 %vm206_vm0, %v205_v0  ;;  %v42_v3 = vld [vmem:[#allocation2 + $0x68] sm:$0xff]  ;;  %v41_v4 = vld [vmem:[#allocation2 + $0x60] sm:$0xff]  ;;  %v40_v5 = vld [vmem:[#allocation2 + $0x58] sm:$0xff]  ;;  %vm116_vm1 = vcmask 450560  }
   0xf   :  { %141 = vmatpush3.msra.mxu0 %v44_v1  ;;  %v39_v6 = vld [vmem:[#allocation2 + $0x50] sm:$0xff]  ;;  %v38_v7 = vld [vmem:[#allocation2 + $0x48] sm:$0xff]  ;;  %v37_v8 = vld [vmem:[#allocation2 + $0x40] sm:$0xff] }
  0x10   :  { %142 = vmatprep.subr.mxu0 %v205_v0  ;;  %v36_v9 = vld [vmem:[#allocation2 + $0x38] sm:$0xff]  ;;  %v35_v10 = vld [vmem:[#allocation2 + $0x30] sm:$0xff]  ;;  %v34_v11 = vld [vmem:[#allocation2 + $0x28] sm:$0xff] }
  0x11   :  { %143 = vmatpush3.msra.mxu0 %v43_v2  ;;  %v33_v12 = vld [vmem:[#allocation2 + $0x20] sm:$0xff]  ;;  %v32_v13 = vld [vmem:[#allocation2 + $0x18] sm:$0xff]  ;;  %v31_v14 = vld [vmem:[#allocation2 + $0x10] sm:$0xff] }
  0x12   :  { %144 = vmatprep.subr.mxu0 %v205_v0  ;;  %v30_v15 = vld [vmem:[#allocation2 + $0x8] sm:$0xff]  ;;  %v29_v16 = vld [vmem:[#allocation2] sm:$0xff] }
  0x13   :  { %145 = vmatpush3.msra.mxu0 %v42_v3  ;;  %v28_v17 = vld [vmem:[%s239_s0] sm:$0x1] }
  0x14   :  { %146 = vmatprep.subr.mxu0 %v205_v0  ;;  %v45_v18 = vld [vmem:[%s241_s2] sm:$0x1] }
  0x15   :  { %147 = vmatpush3.msra.mxu0 %v41_v4 }
  0x16   :  { %148 = vmatprep.subr.mxu0 %v205_v0 }
  0x17   :  { %149 = vmatpush3.msra.mxu0 %v40_v5 }
  0x18   :  { %150 = vmatprep.subr.mxu0 %v205_v0 }
  0x19   :  { %151 = vmatpush3.msra.mxu0 %v39_v6 }
  0x1a   :  { %152 = vmatprep.subr.mxu0 %v205_v0 }
  0x1b   :  { %153 = vmatpush3.msra.mxu0 %v38_v7 }
  0x1c   :  { %154 = vmatprep.subr.mxu0 %v205_v0 }
  0x1d   :  { %155 = vmatpush3.msra.mxu0 %v37_v8 }
  0x1e   :  { %156 = vmatprep.subr.mxu0 %v205_v0 }
  0x1f   :  { %157 = vmatpush3.msra.mxu0 %v36_v9 }
  0x20   :  { %158 = vmatprep.subr.mxu0 %v205_v0 }
  0x21   :  { %159 = vmatpush3.msra.mxu0 %v35_v10 }
  0x22   :  { %160 = vmatprep.subr.mxu0 %v205_v0 }
  0x23   :  { %161 = vmatpush3.msra.mxu0 %v34_v11 }
  0x24   :  { %162 = vmatprep.subr.mxu0 %v205_v0 }
  0x25   :  { %163 = vmatpush3.msra.mxu0 %v33_v12 }
  0x26   :  { %164 = vmatprep.subr.mxu0 %v205_v0 }
  0x27   :  { %165 = vmatpush3.msra.mxu0 %v32_v13 }
  0x28   :  { %166 = vmatprep.subr.mxu0 %v205_v0 }
  0x29   :  { %167 = vmatpush3.msra.mxu0 %v31_v14 }
  0x2a   :  { %168 = vmatprep.subr.mxu0 %v205_v0 }
  0x2b   :  { %169 = vmatpush3.msra.mxu0 %v30_v15 }
  0x2c   :  { %170 = vmatprep.subr.mxu0 %v205_v0 }
  0x2d   :  { %171 = vmatpush3.msra.mxu0 %v29_v16 }
  0x2e   :  { %173 = vmatmul.mubr.f32.vlgmr.msra.gmra.mxu0 %v28_v17 }
  0xee   :  { %v112_v19 = vpop.f32.mrf.mxu0 }
  0xef   :  { %v113_v20 = vadd.f32 %v112_v19, %v45_v18 }
  0xf0   :  { %v174_v21 = vpop.f32.mrf.mxu0 }
  0xf1   :  { %117 = vst.msk [vmem:[%s242_s3] sm:$0x1] %vm116_vm1, %v113_v20 }
  0xf2   :  { %122 = vsyncpa [#allocation3], 1 }

</bundles_post_ra>
